<compile_context>
chip_gen: v7x
topology: tpu7x:2x2x1
jax: 0.10.0
libtpu: 0.0.40
codegen_flags: <defaults>
</compile_context>

<pallas_src>
import functools

import jax
import jax.numpy as jnp
from jax.experimental import pallas as pl
from jax.experimental.pallas import tpu as pltpu


_LANE = 128
_MIB = 1024 * 1024


def _round_up(n, m):
    return ((n + m - 1) // m) * m


def _tpu_vmem_bytes():
    """Physical per-core VMEM; conservative (v7x, 64 MiB) if the query fails."""
    try:
        return int(pltpu.get_tpu_info().vmem_capacity_bytes)
    except Exception:  # noqa: BLE001 - best effort hardware query
        return 64 * _MIB


def _budgets(vmem_bytes):
    """(tile_byte_budget, scoped_vmem_limit, min_grid_tiles) per generation."""
    if vmem_bytes >= 96 * _MIB:
        # v5e / v6e: 128 MiB VMEM, single TensorCore -> big tiles, 1 tile ok.
        return 80 * _MIB, 112 * _MIB, 1
    # v7x: 64 MiB VMEM per TC, 2 TCs per chip -> keep >= 2 tiles when possible
    # so the "parallel" grid axis can shard across both cores.
    return 32 * _MIB, 48 * _MIB, 2


def _choose_tile_d(batch, d_pad, itemsize, tile_budget, min_tiles):
    """Largest multiple-of-128 divisor of d_pad whose VMEM footprint fits."""
    nb = d_pad // _LANE  # number of 128-lane blocks in the (padded) feature axis

    # Per-feature-lane VMEM cost of one grid step:
    #   x in (2 bufs, native) + y out (2 bufs, native)            : 4*B*itemsize
    #   in-kernel f32 working set (x_f32, centered, y_f32)        : 3*B*4
    #   log_gamma + beta in (2 bufs each, f32) + stats out (3 rows, 2 bufs): 40
    per_lane_bytes = 4 * batch * itemsize + 12 * batch + 40
    max_blocks = tile_budget // (per_lane_bytes * _LANE)
    if max_blocks < 1:
        # TODO(synk): fall back to a B-tiled sum/sum-of-squares accumulation
        # path instead of failing for very large batches.
        raise ValueError(
            f"BatchNormFlow kernel: batch={batch} too large for a single "
            f"128-lane tile within the {tile_budget // _MIB} MiB VMEM budget.")

    # Keep >= min_tiles grid steps (dual-TensorCore coverage on v7x).
    if min_tiles > 1 and nb >= min_tiles:
        max_blocks = min(max_blocks, nb // min_tiles)
    max_blocks = max(1, min(int(max_blocks), nb))

    # Largest divisor of nb that fits -> tiles evenly cover d_pad, no extra pad.
    for b in range(max_blocks, 0, -1):
        if nb % b == 0:
            return b * _LANE
    return _LANE  # unreachable (b == 1 always divides)


def _bn_flow_kernel(x_ref, lg_ref, beta_ref, y_ref, stats_ref,
                    *, eps, num_features, tile_d):
    d = pl.program_id(0)

    # Cast-on-load to f32 for the statistics; HBM traffic stays native dtype.
    x = x_ref[...].astype(jnp.float32)            # (B, TD)
    lg = lg_ref[...]                              # (1, TD) f32
    beta = beta_ref[...]                          # (1, TD) f32

    inv_b = jnp.float32(1.0 / x.shape[0])

    # Batch statistics for this feature tile (reduction over the batch axis).
    mean = jnp.sum(x, axis=0, keepdims=True) * inv_b                     # (1, TD)
    centered = x - mean                                                  # (B, TD)
    # NOTE: biased variance (divide by B) with eps folded in, matching the
    # PyTorch module (batch_var including eps also feeds the running stats).
    var = jnp.sum(centered * centered, axis=0, keepdims=True) * inv_b + eps

    inv_std = jax.lax.rsqrt(var)                                         # EUP
    y = jnp.exp(lg) * (centered * inv_std) + beta
    y_ref[...] = y.astype(y_ref.dtype)

    # Per-feature log-det contribution; padded lanes are zeroed so the
    # wrapper-side sum is exact.  log(var=eps) on pad lanes is finite -> safe.
    col = jax.lax.broadcasted_iota(jnp.int32, lg.shape, 1) + d * tile_d
    ld = jnp.where(col < num_features, lg - 0.5 * jnp.log(var), 0.0)

    # Single packed stats stream: rows = [mean, var, logdet_terms].
    stats_ref[...] = jnp.concatenate([mean, var, ld], axis=0)            # (3, TD)


def batchnorm_flow_direct(x, log_gamma, beta, running_mean, running_var,
                          *, momentum=0.0, eps=1e-5, tile_d=None):
    """Training-mode 'direct' forward of BatchNormFlow.

    Returns (y, logdet_scalar, new_running_mean, new_running_var).
    """
    B, D = x.shape
    x_dtype = x.dtype
    itemsize = jnp.dtype(x_dtype).itemsize

    d_pad = _round_up(D, _LANE)                 # pad only to the next 128 lanes
    pad = d_pad - D

    vmem_bytes = _tpu_vmem_bytes()
    tile_budget, vmem_limit, min_tiles = _budgets(vmem_bytes)

    if tile_d is None:
        tile_d = _choose_tile_d(B, d_pad, itemsize, tile_budget, min_tiles)
    assert tile_d % _LANE == 0 and d_pad % tile_d == 0, (tile_d, d_pad)
    num_tiles = d_pad // tile_d

    # Pad feature axis to a lane-dense multiple of 128 (no-op when D%128==0).
    x_p = jnp.pad(x, ((0, 0), (0, pad))) if pad else x
    lg_p = jnp.pad(log_gamma.astype(jnp.float32), (0, pad)).reshape(1, d_pad)
    beta_p = jnp.pad(beta.astype(jnp.float32), (0, pad)).reshape(1, d_pad)

    kernel = functools.partial(_bn_flow_kernel, eps=float(eps),
                               num_features=D, tile_d=tile_d)

    bytes_accessed = (2 * B * d_pad * itemsize   # x read + y write
                      + 5 * d_pad * 4)           # lg, beta in + 3-row stats out
    cost = pl.CostEstimate(flops=8 * B * d_pad,
                           transcendentals=3 * d_pad,
                           bytes_accessed=bytes_accessed)

    y_p, stats = pl.pallas_call(
        kernel,
        out_shape=(
            jax.ShapeDtypeStruct((B, d_pad), x_dtype),      # y (native dtype)
            jax.ShapeDtypeStruct((3, d_pad), jnp.float32),  # [mean; var; logdet]
        ),
        grid=(num_tiles,),
        in_specs=[
            pl.BlockSpec((B, tile_d), lambda d: (0, d)),
            pl.BlockSpec((1, tile_d), lambda d: (0, d)),
            pl.BlockSpec((1, tile_d), lambda d: (0, d)),
        ],
        out_specs=(
            pl.BlockSpec((B, tile_d), lambda d: (0, d)),
            pl.BlockSpec((3, tile_d), lambda d: (0, d)),
        ),
        compiler_params=pltpu.CompilerParams(
            dimension_semantics=("parallel",),
            vmem_limit_bytes=int(vmem_limit),
        ),
        cost_estimate=cost,
    )(x_p, lg_p, beta_p)

    y = y_p[:, :D] if pad else y_p
    batch_mean = stats[0, :D]
    batch_var = stats[1, :D]          # includes eps, matching the PyTorch module
    logdet = jnp.sum(stats[2])        # pad lanes zeroed in-kernel

    # Running-stat update (buffer bookkeeping, plain JAX glue).
    new_running_mean = running_mean * momentum + batch_mean * (1.0 - momentum)
    new_running_var = running_var * momentum + batch_var * (1.0 - momentum)

    return y, logdet, new_running_mean, new_running_var


def _reference(x, log_gamma, beta, eps):
    mean = x.mean(0)
    var = ((x - mean) ** 2).mean(0) + eps
    x_hat = (x - mean) / jnp.sqrt(var)
    y = jnp.exp(log_gamma) * x_hat + beta
    logdet = (log_gamma - 0.5 * jnp.log(var)).sum(-1)
    return y, logdet, mean, var


if __name__ == "__main__":
    key = jax.random.PRNGKey(0)
    k_x, k_g, k_b = jax.random.split(key, 3)
    eps = 1e-5

    # --- test 1: module-sized shapes (B=16, num_inputs=32), single tile ---
    B, D = 16, 32
    x = jax.random.normal(k_x, (B, D), dtype=jnp.float32) * 2.0 + 0.5
    log_gamma = 0.1 * jax.random.normal(k_g, (D,), dtype=jnp.float32)
    beta = 0.1 * jax.random.normal(k_b, (D,), dtype=jnp.float32)
    running_mean = jnp.zeros((D,), jnp.float32)
    running_var = jnp.ones((D,), jnp.float32)

    y, logdet, rm, rv = batchnorm_flow_direct(
        x, log_gamma, beta, running_mean, running_var, momentum=0.0, eps=eps)
    jax.block_until_ready((y, logdet, rm, rv))

    y_ref, logdet_ref, mean_ref, var_ref = _reference(x, log_gamma, beta, eps)
    assert jnp.allclose(y, y_ref, atol=1e-5, rtol=1e-5), "y mismatch"
    assert jnp.allclose(logdet, logdet_ref, atol=1e-5, rtol=1e-5), "logdet mismatch"
    assert jnp.allclose(rm, mean_ref, atol=1e-5), "running_mean mismatch"
    assert jnp.allclose(rv, var_ref, atol=1e-5), "running_var mismatch"

    # momentum bookkeeping check on the same data
    _, _, rm_m, rv_m = batchnorm_flow_direct(
        x, log_gamma, beta, running_mean, running_var, momentum=0.5, eps=eps)
    jax.block_until_ready((rm_m, rv_m))
    assert jnp.allclose(rm_m, 0.5 * running_mean + 0.5 * mean_ref, atol=1e-5)
    assert jnp.allclose(rv_m, 0.5 * running_var + 0.5 * var_ref, atol=1e-5)

    # --- test 2: multi-tile grid + lane-padding mask path (D=160, TD=128) ---
    B2, D2 = 16, 160
    k_x2, k_g2, k_b2 = jax.random.split(jax.random.PRNGKey(1), 3)
    x2 = jax.random.normal(k_x2, (B2, D2), dtype=jnp.float32) - 3.0
    lg2 = 0.1 * jax.random.normal(k_g2, (D2,), dtype=jnp.float32)
    b2 = 0.1 * jax.random.normal(k_b2, (D2,), dtype=jnp.float32)
    y2, ld2, rm2, rv2 = batchnorm_flow_direct(
        x2, lg2, b2, jnp.zeros((D2,)), jnp.ones((D2,)),
        momentum=0.0, eps=eps, tile_d=128)
    jax.block_until_ready((y2, ld2, rm2, rv2))
    y2_ref, ld2_ref, _, _ = _reference(x2, lg2, b2, eps)
    assert jnp.allclose(y2, y2_ref, atol=1e-5, rtol=1e-5), "y mismatch (tiled)"
    assert jnp.allclose(ld2, ld2_ref, atol=1e-4, rtol=1e-5), "logdet mismatch (tiled)"

    # --- test 3: auto tile selection on a no-pad, multiple-of-128 D ---
    B3, D3 = 16, 512
    k_x3, k_g3, k_b3 = jax.random.split(jax.random.PRNGKey(2), 3)
    x3 = jax.random.normal(k_x3, (B3, D3), dtype=jnp.float32) * 1.5
    lg3 = 0.1 * jax.random.normal(k_g3, (D3,), dtype=jnp.float32)
    b3 = 0.1 * jax.random.normal(k_b3, (D3,), dtype=jnp.float32)
    y3, ld3, _, _ = batchnorm_flow_direct(
        x3, lg3, b3, jnp.zeros((D3,)), jnp.ones((D3,)), momentum=0.0, eps=eps)
    jax.block_until_ready((y3, ld3))
    y3_ref, ld3_ref, _, _ = _reference(x3, lg3, b3, eps)
    assert jnp.allclose(y3, y3_ref, atol=1e-5, rtol=1e-5), "y mismatch (auto tile)"
    assert jnp.allclose(ld3, ld3_ref, atol=1e-4, rtol=1e-5), "logdet mismatch (auto tile)"

    print("KERNEL_OK")
</pallas_src>

<mosaic_0001>
module attributes {stable_mosaic.version = 11 : i64} {
  func.func @_bn_flow_kernel(%arg0: i32, %arg1: memref<16x128xf32, #tpu.memory_space<vmem>>, %arg2: memref<1x128xf32, #tpu.memory_space<vmem>>, %arg3: memref<1x128xf32, #tpu.memory_space<vmem>>, %arg4: memref<16x128xf32, #tpu.memory_space<vmem>>, %arg5: memref<3x128xf32, #tpu.memory_space<vmem>>) attributes {dimension_semantics = [#tpu.dimension_semantics<parallel>], iteration_bounds = array<i64: 1>, scalar_prefetch = 0 : i64, scratch_operands = 0 : i64, tpu.core_type = #tpu.core_type<tc>, window_params = [{transform_indices = @transform_0, window_bounds = array<i64: 16, 128>}, {transform_indices = @transform_1, window_bounds = array<i64: 1, 128>}, {transform_indices = @transform_2, window_bounds = array<i64: 1, 128>}, {transform_indices = @transform_3, window_bounds = array<i64: 16, 128>}, {transform_indices = @transform_4, window_bounds = array<i64: 3, 128>}]} {
    %c0 = arith.constant 0 : index
    %c0_0 = arith.constant 0 : index
    %0 = vector.load %arg1[%c0, %c0_0] : memref<16x128xf32, #tpu.memory_space<vmem>>, vector<16x128xf32>
    %c0_1 = arith.constant 0 : index
    %c0_2 = arith.constant 0 : index
    %1 = vector.load %arg2[%c0_1, %c0_2] : memref<1x128xf32, #tpu.memory_space<vmem>>, vector<1x128xf32>
    %c0_3 = arith.constant 0 : index
    %c0_4 = arith.constant 0 : index
    %2 = vector.load %arg3[%c0_3, %c0_4] : memref<1x128xf32, #tpu.memory_space<vmem>>, vector<1x128xf32>
    %cst = arith.constant dense<0.000000e+00> : vector<128xf32>
    %3 = vector.multi_reduction <add>, %0, %cst [0] : vector<16x128xf32> to vector<128xf32>
    %4 = vector.shape_cast %3 : vector<128xf32> to vector<1x128xf32>
    %cst_5 = arith.constant 6.250000e-02 : f32
    %5 = vector.broadcast %cst_5 : f32 to vector<1x128xf32>
    %6 = arith.mulf %4, %5 : vector<1x128xf32>
    %7 = vector.broadcast %6 : vector<1x128xf32> to vector<16x128xf32>
    %8 = arith.subf %0, %7 : vector<16x128xf32>
    %9 = arith.mulf %8, %8 : vector<16x128xf32>
    %cst_6 = arith.constant dense<0.000000e+00> : vector<128xf32>
    %10 = vector.multi_reduction <add>, %9, %cst_6 [0] : vector<16x128xf32> to vector<128xf32>
    %11 = vector.shape_cast %10 : vector<128xf32> to vector<1x128xf32>
    %cst_7 = arith.constant 6.250000e-02 : f32
    %12 = vector.broadcast %cst_7 : f32 to vector<1x128xf32>
    %13 = arith.mulf %11, %12 : vector<1x128xf32>
    %cst_8 = arith.constant 9.99999974E-6 : f32
    %14 = vector.broadcast %cst_8 : f32 to vector<1x128xf32>
    %15 = arith.addf %13, %14 : vector<1x128xf32>
    %16 = math.rsqrt %15 : vector<1x128xf32>
    %17 = math.exp %1 : vector<1x128xf32>
    %18 = vector.broadcast %16 : vector<1x128xf32> to vector<16x128xf32>
    %19 = arith.mulf %8, %18 : vector<16x128xf32>
    %20 = vector.broadcast %17 : vector<1x128xf32> to vector<16x128xf32>
    %21 = arith.mulf %20, %19 : vector<16x128xf32>
    %22 = vector.broadcast %2 : vector<1x128xf32> to vector<16x128xf32>
    %23 = arith.addf %21, %22 : vector<16x128xf32>
    %c0_9 = arith.constant 0 : index
    %c0_10 = arith.constant 0 : index
    %24 = vector.load %arg4[%c0_9, %c0_10] : memref<16x128xf32, #tpu.memory_space<vmem>>, vector<16x128xf32>
    tpu.vector_store %arg4[%c0_9, %c0_10], %23 {strides = array<i32>} : memref<16x128xf32, #tpu.memory_space<vmem>>, vector<16x128xf32>,
    %25 = tpu.iota {dimensions = array<i32: 1>} : vector<1x128xi32>
    %c128_i32 = arith.constant 128 : i32
    %26 = arith.muli %arg0, %c128_i32 : i32
    %27 = vector.broadcast %26 : i32 to vector<1x128xi32>
    %28 = arith.addi %25, %27 : vector<1x128xi32>
    %c32_i32 = arith.constant 32 : i32
    %29 = vector.broadcast %c32_i32 : i32 to vector<1x128xi32>
    %30 = arith.cmpi slt, %28, %29 : vector<1x128xi32>
    %31 = math.log %15 : vector<1x128xf32>
    %cst_11 = arith.constant 5.000000e-01 : f32
    %32 = vector.broadcast %cst_11 : f32 to vector<1x128xf32>
    %33 = arith.mulf %32, %31 : vector<1x128xf32>
    %34 = arith.subf %1, %33 : vector<1x128xf32>
    %cst_12 = arith.constant 0.000000e+00 : f32
    %35 = vector.broadcast %cst_12 : f32 to vector<1x128xf32>
    %36 = arith.select %30, %34, %35 : vector<1x128xi1>, vector<1x128xf32>
    %37 = tpu.concatenate %6, %15, %36 in 0 : vector<1x128xf32>, vector<1x128xf32>, vector<1x128xf32> -> vector<3x128xf32>
    %c0_13 = arith.constant 0 : index
    %c0_14 = arith.constant 0 : index
    %38 = vector.load %arg5[%c0_13, %c0_14] : memref<3x128xf32, #tpu.memory_space<vmem>>, vector<3x128xf32>
    tpu.vector_store %arg5[%c0_13, %c0_14], %37 {strides = array<i32>} : memref<3x128xf32, #tpu.memory_space<vmem>>, vector<3x128xf32>,
    return
  }
  func.func @transform_0(%arg0: i32) -> (i32, i32) {
    %c0_i32 = arith.constant 0 : i32
    %c0_i32_0 = arith.constant 0 : i32
    return %c0_i32, %arg0 : i32, i32
  }
  func.func @transform_1(%arg0: i32) -> (i32, i32) {
    %c0_i32 = arith.constant 0 : i32
    %c0_i32_0 = arith.constant 0 : i32
    return %c0_i32, %arg0 : i32, i32
  }
  func.func @transform_2(%arg0: i32) -> (i32, i32) {
    %c0_i32 = arith.constant 0 : i32
    %c0_i32_0 = arith.constant 0 : i32
    return %c0_i32, %arg0 : i32, i32
  }
  func.func @transform_3(%arg0: i32) -> (i32, i32) {
    %c0_i32 = arith.constant 0 : i32
    %c0_i32_0 = arith.constant 0 : i32
    return %c0_i32, %arg0 : i32, i32
  }
  func.func @transform_4(%arg0: i32) -> (i32, i32) {
    %c0_i32 = arith.constant 0 : i32
    %c0_i32_0 = arith.constant 0 : i32
    return %c0_i32, %arg0 : i32, i32
  }
}

</mosaic_0001>

<bundles_post_ra>
// kernel: tpu_custom_call.1
= control target key start
LH: loop header
LB: loop body
LE: loop exit
PB: predicated region body
PF: predicated region fallthrough
CT: control target
= control target key end

     0   :  { %10 = vsyncpa [#allocation3], 0  ;;  %s293_s0 = inlined_call_operand.hbm [shape: f32[16,128], index: 0, kind: input, shape index: {}]   ;;  %s294_s1 = inlined_call_operand.vmem [shape: f32[1,128], index: 1, kind: input, shape index: {}]   ;;  %s295_s2 = inlined_call_operand.vmem [shape: f32[1,128], index: 2, kind: input, shape index: {}]   ;;  %s296_s3 = inlined_call_operand.hbm [shape: f32[16,128], index: 3, kind: output, shape index: {0}]   ;;  %s297_s4 = inlined_call_operand.hbm [shape: f32[3,128], index: 4, kind: output, shape index: {1}]  }
   0x1   :  { %11 = vsyncpa [#allocation4], 0 }
   0x2   :  { %12 = vsyncpa [#allocation7], 0  ;;  %s214_s15 = smov [#allocation2]   ;;  %s142_s19 = scalar_lea.hbm %s293_s0, 256 }
   0x3   :  { %s18_s16 = sshll.u32 %s214_s15, 4  ;;  %p143_p0 = scmp.ne.s32.totalorder %s293_s0, %s142_s19  ;;  %s19_s16 = int_to_ptr.vmem [resolvable:$true] %s18_s16 }
   0x4   :  { %p146_p1 = scmp.lt.u32.totalorder %s142_s19, %s293_s0 }
   0x6   :  { %p148_p2 = pnand %p146_p1, %p143_p0 }
   0x8   :  { %151 = shalt.err (!%p148_p2)
}
   0x9   :  { %s152_s24 = scalar_lea.vmem %s19_s16, 256  ;;  %p157_p4 = scmp.lt.s32.totalorder %s19_s16, %s19_s16 }
   0xa   :  { %p153_p3 = scmp.ne.s32.totalorder %s19_s16, %s152_s24  ;;  %p158_p5 = scmp.lt.s32.totalorder %s152_s24, %s152_s24 }
   0xc   :  { %p159_p6 = por %p158_p5, %p157_p4 }
   0xe   :  { %p160_p7 = pnand %p159_p6, %p153_p3 }
  0x10   :  { %163 = shalt.err (!%p160_p7)
}
  0x11   :  { %s215_s25 = smov 128   ;;  %s216_s26 = smov 8  }
  0x12   :  { %24 = dma.hbm_to_vmem [thread:$0]  %s293_s0, 256, %s19_s16, [#allocation3], %s215_s25, %s215_s25, %s216_s26  }
  0x13   :  { %208 = dma.done.wait [#allocation3], 256  }
  0x14   :  { %209 = vsyncadd [#allocation3], 4294967040  ;;  %v32_v0 = vld [vmem:[#allocation2] sm:$0xff]  ;;  %v33_v1 = vld [vmem:[#allocation2 + $0x8] sm:$0xff]  ;;  %v63_v24 = vlaneseq  ;;  %s217_s5 = smov [#allocation5]   ;;  %vm94_vm1 = vcmask 1040384  }
  0x15   :  { %v36_v2 = vadd.f32 %v33_v1, %v32_v0  ;;  %v34_v18 = vld [vmem:[%s294_s1] sm:$0x1]  ;;  %s104_s6 = sshll.u32 %s217_s5, 4  ;;  %s218_s7 = smov [#allocation6]   ;;  %vm96_vm2 = vcmask 1041408   ;;  %s105_s6 = int_to_ptr.vmem [resolvable:$true] %s104_s6 }
  0x16   :  { %v58_v21 = vmul.f32 1.442695, %v34_v18  ;;  %v64_v26 = vshrl.u32 %v63_v24, 7  ;;  %v81_v34 = vand.u32 127, %v63_v24  ;;  %v130_v35 = vld [vmem:[%s295_s2] ss:$0 sm:$0xff]  ;;  %p169_p9 = scmp.lt.s32.totalorder %s105_s6, %s105_s6 }
  0x17   :  { %v37_v3 = vrot.slane %v36_v2, 4  ;;  %s117_s8 = sshll.u32 %s218_s7, 4  ;;  %s164_s2 = scalar_lea.vmem %s105_s6, 256  ;;  %s118_s8 = int_to_ptr.vmem [resolvable:$true] %s117_s8 }
  0x18   :  { %136 = vpow2.f32 %v58_v21  ;;  %v65_v27 = vsub.s32 0, %v64_v26  ;;  %vm85_vm0 = vcmp.lt.s32.totalorder %v81_v34, 32  ;;  %p165_p8 = scmp.ne.s32.totalorder %s105_s6, %s164_s2  ;;  %p170_p10 = scmp.lt.s32.totalorder %s164_s2, %s164_s2 }
  0x19   :  { %v38_v4 = vadd.f32 %v37_v3, %v36_v2 }
  0x1a   :  { %p171_p11 = por %p170_p10, %p169_p9 }
  0x1b   :  { %v39_v5 = vrot.slane %v38_v4, 2 }
  0x1c   :  { %p172_p12 = pnand %p171_p11, %p165_p8 }
  0x1d   :  { %v40_v6 = vadd.f32 %v39_v5, %v38_v4 }
  0x1f   :  { %v41_v7 = vrot.slane %v40_v6, 1 }
  0x21   :  { %v42_v8 = vadd.f32 %v41_v7, %v40_v6 }
  0x22   :  { %v137_v28 = vpop.eup %136 }
  0x23   :  { %v43_v9 = vmul.f32 0.0625, %v42_v8  ;;  %v66_v29 = vrot.slane %v137_v28, %v65_v27 }
  0x25   :  { %v44_v10 = vsub.f32 %v32_v0, %v43_v9  ;;  %v45_v11 = vsub.f32 %v33_v1, %v43_v9 }
  0x27   :  { %v46_v12 = vmul.f32 %v44_v10, %v44_v10  ;;  %v47_v13 = vmul.f32 %v45_v11, %v45_v11 }
  0x29   :  { %v48_v14 = vadd.f32 %v47_v13, %v46_v12 }
  0x2b   :  { %v49_v15 = vrot.slane %v48_v14, 4 }
  0x2d   :  { %v50_v16 = vadd.f32 %v49_v15, %v48_v14 }
  0x2f   :  { %v51_v17 = vrot.slane %v50_v16, 2 }
  0x31   :  { %v52_v19 = vadd.f32 %v51_v17, %v50_v16 }
  0x33   :  { %v53_v20 = vrot.slane %v52_v19, 1 }
  0x35   :  { %v54_v22 = vadd.f32 %v53_v20, %v52_v19 }
  0x37   :  { %v55_v23 = vmul.f32 0.0625, %v54_v22 }
  0x39   :  { %v56_v25 = vadd.f32 1e-05, %v55_v23 }
  0x3b   :  { %138 = vrsqrt.f32 %v56_v25  ;;  %v95_v44 = vsel %vm94_vm1, %v43_v9, %v56_v25 }
  0x3c   :  { %140 = vlog2.f32 %v56_v25 }
  0x45   :  { %v139_v30 = vpop.eup %138 }
  0x46   :  { %v141_v31 = vpop.eup %140  ;;  %v60_v32 = vmul.f32 %v139_v30, %v44_v10  ;;  %v61_v33 = vmul.f32 %v139_v30, %v45_v11 }
  0x47   :  { %v87_v36 = vmul.f32 0.6931472, %v141_v31 }
  0x48   :  { %v68_v37 = vmul.f32 %v66_v29, %v60_v32  ;;  %v69_v38 = vmul.f32 %v66_v29, %v61_v33 }
  0x49   :  { %v88_v39 = vmul.f32 0.5, %v87_v36 }
  0x4a   :  { %v76_v40 = vadd.f32 %v130_v35, %v68_v37  ;;  %v77_v41 = vadd.f32 %v130_v35, %v69_v38 }
  0x4b   :  { %v89_v42 = vsub.f32 %v34_v18, %v88_v39 }
  0x4c   :  { %78 = vst [vmem:[#allocation5] sm:$0xff] %v76_v40  ;;  %79 = vst [vmem:[#allocation5 + $0x8] sm:$0xff] %v77_v41 }
  0x4d   :  { %v90_v43 = vsel %vm85_vm0, %v89_v42, 0.0 }
  0x4e   :  { %175 = shalt.err (!%p172_p12)
}
  0x4f   :  { %s176_s11 = scalar_lea.hbm %s296_s3, 256 }
  0x50   :  { %p177_p13 = scmp.ne.s32.totalorder %s296_s3, %s176_s11  ;;  %p180_p0 = scmp.lt.u32.totalorder %s176_s11, %s296_s3 }
  0x52   :  { %p182_p1 = pnand %p180_p0, %p177_p13 }
  0x54   :  { %185 = shalt.err (!%p182_p1)
}
  0x55   :  { %110 = dma.vmem_to_hbm [thread:$0]  %s105_s6, 256, %s296_s3, [#allocation4], %s215_s25, %s215_s25, %s216_s26   ;;  %v92_v45 = vrot.slane %v90_v43, 6 }
  0x56   :  { %s186_s18 = scalar_lea.vmem %s118_s8, 64  ;;  %p191_p3 = scmp.lt.s32.totalorder %s118_s8, %s118_s8 }
  0x57   :  { %v97_v46 = vsel %vm96_vm2, %v95_v44, %v92_v45  ;;  %p187_p2 = scmp.ne.s32.totalorder %s118_s8, %s186_s18  ;;  %p192_p4 = scmp.lt.s32.totalorder %s186_s18, %s186_s18 }
  0x58   :  { %98 = vst [vmem:[#allocation6] sm:$0x7] %v97_v46 }
  0x59   :  { %p193_p5 = por %p192_p4, %p191_p3 }
  0x5b   :  { %p194_p6 = pnand %p193_p5, %p187_p2 }
  0x5d   :  { %197 = shalt.err (!%p194_p6)
}
  0x5e   :  { %s198_s21 = scalar_lea.hbm %s297_s4, 64 }
  0x5f   :  { %p199_p7 = scmp.ne.s32.totalorder %s297_s4, %s198_s21  ;;  %p202_p8 = scmp.lt.u32.totalorder %s198_s21, %s297_s4 }
  0x61   :  { %p204_p9 = pnand %p202_p8, %p199_p7 }
  0x63   :  { %207 = shalt.err (!%p204_p9)
}
  0x64   :  { %120 = dma.vmem_to_hbm [thread:$0]  %s118_s8, 64, %s297_s4, [#allocation7]  }
  0x65   :  { %210 = dma.done.wait [#allocation4], 256  }
  0x66   :  { %211 = vsyncadd [#allocation4], 4294967040 }
  0x67   :  { %212 = dma.done.wait [#allocation7], 64  }
  0x68   :  { %213 = vsyncadd [#allocation7], 4294967232 }
  0x69   :  { %127 = vsyncpa [#allocation3], 1 }
  0x6a   :  { %128 = vsyncpa [#allocation4], 1 }
  0x6b   :  { %129 = vsyncpa [#allocation7], 1 }

</bundles_post_ra>
